<compile_context>
chip_gen: v5e
topology: v5e:2x2
jax: 0.10.0
libtpu: 0.0.40
codegen_flags: <defaults>
</compile_context>

<pallas_src>
import jax
import jax.numpy as jnp
from jax.experimental import pallas as pl
from jax.experimental.pallas import tpu as pltpu


def _round_up(x, m):
    return (x + m - 1) // m * m


def _linear_kernel(x_ref, w_ref, b_ref, o_ref, acc_ref):
    """One (TM, TN) output tile of y = x @ w + b, accumulated over K tiles."""
    k = pl.program_id(2)

    @pl.when(k == 0)
    def _():
        acc_ref[...] = jnp.zeros_like(acc_ref)

    acc_ref[...] += jnp.dot(
        x_ref[...], w_ref[...], preferred_element_type=jnp.float32
    )

    @pl.when(k == pl.num_programs(2) - 1)
    def _():
        o_ref[...] = (acc_ref[...] + b_ref[...].astype(jnp.float32)).astype(o_ref.dtype)


def pallas_linear(x, w, b, *, compute_dtype=jnp.bfloat16, tm=256, tn=256, tk=512):
    """y = x @ w + b with w stored as (in_features, out_features) = W^T."""
    m, k = x.shape
    k2, n = w.shape
    assert k == k2 and b.shape == (n,)

    # MXU / lane friendly tiles; clamp to (padded) problem size for small shapes.
    tm = min(tm, _round_up(m, 8))
    tn = min(tn, _round_up(n, 128))
    tk = min(tk, _round_up(k, 128))
    mp, kp, np_ = _round_up(m, tm), _round_up(k, tk), _round_up(n, tn)

    # Zero-pad (K padding contributes 0 to the accumulation -> exact).
    xp = jnp.zeros((mp, kp), compute_dtype).at[:m, :k].set(x.astype(compute_dtype))
    wp = jnp.zeros((kp, np_), compute_dtype).at[:k, :n].set(w.astype(compute_dtype))
    bp = jnp.zeros((1, np_), jnp.float32).at[0, :n].set(b.astype(jnp.float32))

    grid = (mp // tm, np_ // tn, kp // tk)

    out = pl.pallas_call(
        _linear_kernel,
        out_shape=jax.ShapeDtypeStruct((mp, np_), jnp.float32),
        grid_spec=pltpu.PrefetchScalarGridSpec(
            num_scalar_prefetch=0,
            grid=grid,
            in_specs=[
                pl.BlockSpec((tm, tk), lambda i, j, kk: (i, kk)),
                pl.BlockSpec((tk, tn), lambda i, j, kk: (kk, j)),
                pl.BlockSpec((1, tn), lambda i, j, kk: (0, j)),
            ],
            out_specs=pl.BlockSpec((tm, tn), lambda i, j, kk: (i, j)),
            scratch_shapes=[pltpu.VMEM((tm, tn), jnp.float32)],
        ),
        compiler_params=pltpu.CompilerParams(
            dimension_semantics=("parallel", "parallel", "arbitrary")
        ),
    )(xp, wp, bp)

    return out[:m, :n]


def linear_forward(m_f, d_f, params):
    """Linear.forward: apply the two independent Linear layers."""
    mf_out = pallas_linear(m_f, params["w_mf"], params["b_mf"])
    df_out = pallas_linear(d_f, params["w_df"], params["b_df"])
    return mf_out, df_out


def _reference(m_f, d_f, params):
    """Pure-JAX f32 reference of the same forward."""
    mf_out = m_f @ params["w_mf"] + params["b_mf"]
    df_out = d_f @ params["w_df"] + params["b_df"]
    return mf_out, df_out


def _torch_linear_init(key, fan_in, fan_out):
    """Mimic nn.Linear default init: U(-1/sqrt(fan_in), 1/sqrt(fan_in))."""
    kw, kb = jax.random.split(key)
    bound = 1.0 / (fan_in ** 0.5)
    w = jax.random.uniform(kw, (fan_in, fan_out), jnp.float32, -bound, bound)
    b = jax.random.uniform(kb, (fan_out,), jnp.float32, -bound, bound)
    return w, b


if __name__ == "__main__":
    # Small shapes consistent with the module: args.numrna, args.numdis, args.hidden.
    n_rna, n_dis, hidden = 24, 16, 32

    key = jax.random.PRNGKey(0)
    k_mf, k_df, k_pm, k_pd = jax.random.split(key, 4)

    # m_f: (rows, n_rna) RNA feature matrix; d_f: (rows, n_dis) disease features.
    m_f = jax.random.normal(k_mf, (n_rna, n_rna), jnp.float32)
    d_f = jax.random.normal(k_df, (n_dis, n_dis), jnp.float32)

    w_mf, b_mf = _torch_linear_init(k_pm, n_rna, hidden)
    w_df, b_df = _torch_linear_init(k_pd, n_dis, hidden)
    params = {"w_mf": w_mf, "b_mf": b_mf, "w_df": w_df, "b_df": b_df}

    mf_out, df_out = linear_forward(m_f, d_f, params)
    mf_out = jax.block_until_ready(mf_out)
    df_out = jax.block_until_ready(df_out)

    ref_mf, ref_df = _reference(m_f, d_f, params)
    assert mf_out.shape == (n_rna, hidden)
    assert df_out.shape == (n_dis, hidden)
    # bf16 MXU inputs with f32 accumulation -> ~1e-2 relative tolerance.
    assert jnp.allclose(mf_out, ref_mf, atol=2e-2, rtol=2e-2), "mf mismatch vs reference"
    assert jnp.allclose(df_out, ref_df, atol=2e-2, rtol=2e-2), "df mismatch vs reference"
    print("KERNEL_OK")
</pallas_src>

<mosaic_0001>
module attributes {stable_mosaic.version = 11 : i64} {
  func.func @_linear_kernel(%arg0: i32, %arg1: i32, %arg2: i32, %arg3: memref<24x128xbf16, #tpu.memory_space<vmem>>, %arg4: memref<128x128xbf16, #tpu.memory_space<vmem>>, %arg5: memref<1x128xf32, #tpu.memory_space<vmem>>, %arg6: memref<24x128xf32, #tpu.memory_space<vmem>>, %arg7: memref<24x128xf32, #tpu.memory_space<vmem>>) attributes {dimension_semantics = [#tpu.dimension_semantics<parallel>, #tpu.dimension_semantics<parallel>, #tpu.dimension_semantics<arbitrary>], iteration_bounds = array<i64: 1, 1, 1>, scalar_prefetch = 0 : i64, scratch_operands = 1 : i64, tpu.core_type = #tpu.core_type<tc>, window_params = [{transform_indices = @transform_0, window_bounds = array<i64: 24, 128>}, {transform_indices = @transform_1, window_bounds = array<i64: 128, 128>}, {transform_indices = @transform_2, window_bounds = array<i64: 1, 128>}, {transform_indices = @transform_3, window_bounds = array<i64: 24, 128>}]} {
    %c0_i32 = arith.constant 0 : i32
    %0 = arith.cmpi eq, %arg2, %c0_i32 : i32
    %1 = arith.extui %0 : i1 to i32
    %c0_i32_0 = arith.constant 0 : i32
    %2 = arith.cmpi ne, %1, %c0_i32_0 : i32
    scf.if %2 {
      %cst_10 = arith.constant 0.000000e+00 : f32
      %12 = vector.broadcast %cst_10 : f32 to vector<24x128xf32>
      %c0_11 = arith.constant 0 : index
      %c0_12 = arith.constant 0 : index
      %13 = vector.load %arg7[%c0_11, %c0_12] : memref<24x128xf32, #tpu.memory_space<vmem>>, vector<24x128xf32>
      tpu.vector_store %arg7[%c0_11, %c0_12], %12 {strides = array<i32>} : memref<24x128xf32, #tpu.memory_space<vmem>>, vector<24x128xf32>,
    } else {
    }
    %c0 = arith.constant 0 : index
    %c0_1 = arith.constant 0 : index
    %3 = vector.load %arg7[%c0, %c0_1] : memref<24x128xf32, #tpu.memory_space<vmem>>, vector<24x128xf32>
    %c0_2 = arith.constant 0 : index
    %c0_3 = arith.constant 0 : index
    %4 = vector.load %arg3[%c0_2, %c0_3] : memref<24x128xbf16, #tpu.memory_space<vmem>>, vector<24x128xbf16>
    %c0_4 = arith.constant 0 : index
    %c0_5 = arith.constant 0 : index
    %5 = vector.load %arg4[%c0_4, %c0_5] : memref<128x128xbf16, #tpu.memory_space<vmem>>, vector<128x128xbf16>
    %cst = arith.constant dense<0.000000e+00> : vector<24x128xf32>
    %6 = tpu.matmul %4, %5, %cst {dimension_numbers = #tpu.dot_dimension_numbers<[1], [0], [0], [1], [0, 0, 1, 1], [], []>} : vector<24x128xbf16>, vector<128x128xbf16>, vector<24x128xf32> -> vector<24x128xf32>
    %7 = arith.addf %3, %6 : vector<24x128xf32>
    %c0_6 = arith.constant 0 : index
    %c0_7 = arith.constant 0 : index
    %8 = vector.load %arg7[%c0_6, %c0_7] : memref<24x128xf32, #tpu.memory_space<vmem>>, vector<24x128xf32>
    tpu.vector_store %arg7[%c0_6, %c0_7], %7 {strides = array<i32>} : memref<24x128xf32, #tpu.memory_space<vmem>>, vector<24x128xf32>,
    %c0_i32_8 = arith.constant 0 : i32
    %9 = arith.cmpi eq, %arg2, %c0_i32_8 : i32
    %10 = arith.extui %9 : i1 to i32
    %c0_i32_9 = arith.constant 0 : i32
    %11 = arith.cmpi ne, %10, %c0_i32_9 : i32
    scf.if %11 {
      %c0_10 = arith.constant 0 : index
      %c0_11 = arith.constant 0 : index
      %12 = vector.load %arg7[%c0_10, %c0_11] : memref<24x128xf32, #tpu.memory_space<vmem>>, vector<24x128xf32>
      %c0_12 = arith.constant 0 : index
      %c0_13 = arith.constant 0 : index
      %13 = vector.load %arg5[%c0_12, %c0_13] : memref<1x128xf32, #tpu.memory_space<vmem>>, vector<1x128xf32>
      %14 = vector.broadcast %13 : vector<1x128xf32> to vector<24x128xf32>
      %15 = arith.addf %12, %14 : vector<24x128xf32>
      %c0_14 = arith.constant 0 : index
      %c0_15 = arith.constant 0 : index
      %16 = vector.load %arg6[%c0_14, %c0_15] : memref<24x128xf32, #tpu.memory_space<vmem>>, vector<24x128xf32>
      tpu.vector_store %arg6[%c0_14, %c0_15], %15 {strides = array<i32>} : memref<24x128xf32, #tpu.memory_space<vmem>>, vector<24x128xf32>,
    } else {
    }
    return
  }
  func.func @transform_0(%arg0: i32, %arg1: i32, %arg2: i32) -> (i32, i32) {
    %c0_i32 = arith.constant 0 : i32
    return %arg0, %arg2 : i32, i32
  }
  func.func @transform_1(%arg0: i32, %arg1: i32, %arg2: i32) -> (i32, i32) {
    %c0_i32 = arith.constant 0 : i32
    return %arg2, %arg1 : i32, i32
  }
  func.func @transform_2(%arg0: i32, %arg1: i32, %arg2: i32) -> (i32, i32) {
    %c0_i32 = arith.constant 0 : i32
    %c0_i32_0 = arith.constant 0 : i32
    return %c0_i32, %arg1 : i32, i32
  }
  func.func @transform_3(%arg0: i32, %arg1: i32, %arg2: i32) -> (i32, i32) {
    %c0_i32 = arith.constant 0 : i32
    return %arg0, %arg1 : i32, i32
  }
}

</mosaic_0001>

<bundles_post_ra>
// kernel: tpu_custom_call.1
= control target key start
LH: loop header
LB: loop body
LE: loop exit
PB: predicated region body
PF: predicated region fallthrough
CT: control target
= control target key end

     0   :  { %8 = vsyncpa [#allocation4], 0  ;;  %s372_s0 = inlined_call_operand.hbm [shape: bf16[24,128], index: 0, kind: input, shape index: {}]   ;;  %s373_s1 = inlined_call_operand.hbm [shape: bf16[128,128], index: 1, kind: input, shape index: {}]   ;;  %s374_s2 = inlined_call_operand.vmem [shape: f32[1,128], index: 2, kind: input, shape index: {}]   ;;  %s375_s3 = inlined_call_operand.hbm [shape: f32[24,128], index: 3, kind: output, shape index: {}]  }
   0x1   :  { %9 = vsyncpa [#allocation7], 0 }
   0x2   :  { %10 = vsyncpa [#allocation5], 0  ;;  %s15_s14 = sshll.u32 %s372_s0, 4  ;;  %s333_s15 = smov [#allocation3]   ;;  %s16_s14 = int_to_ptr.hbm [resolvable:$true] %s15_s14 }
   0x3   :  { %s17_s16 = sshll.u32 %s333_s15, 4  ;;  %s28_s19 = sshll.u32 %s373_s1, 4  ;;  %s18_s16 = int_to_ptr.vmem [resolvable:$true] %s17_s16  ;;  %s29_s19 = int_to_ptr.hbm [resolvable:$true] %s28_s19 }
   0x4   :  { %s334_s20 = smov 64   ;;  %s335_s21 = smov 4  }
   0x5   :  { %23 = dma.hbm_to_vmem [thread:$0]  %s16_s14, 192, %s18_s16, [#allocation4], %s334_s20, %s334_s20, %s335_s21  }
   0x6   :  { %s336_s22 = smov [#allocation6]  }
   0x7   :  { %s30_s23 = sshll.u32 %s336_s22, 4  ;;  %s31_s23 = int_to_ptr.vmem [resolvable:$true] %s30_s23 }
   0x8   :  { %36 = dma.hbm_to_vmem [thread:$0]  %s29_s19, 1024, %s31_s23, [#allocation7], %s334_s20, %s334_s20, %s335_s21  }
   0x9   :  { %327 = dma.done.wait [#allocation4], 192  }
   0xa   :  { %328 = vsyncadd [#allocation4], 4294967104 }
   0xb   :  { %329 = dma.done.wait [#allocation7], 1024  }
   0xc   :  { %330 = vsyncadd [#allocation7], 4294966272  ;;  %v238_v0 = vld [vmem:[#allocation6 + $0x38] sm:$0xff]  ;;  %v237_v1 = vld [vmem:[#allocation6 + $0x30] sm:$0xff]  ;;  %s337_s24 = smov [#allocation8]   ;;  %s180_s28 = sshll.u32 %s375_s3, 4  ;;  %s181_s28 = int_to_ptr.hbm [resolvable:$true] %s180_s28 }
   0xd   :  { %134 = vmatpush.bf16.msra.mxu0 %v238_v0  ;;  %239 = vmatpush.bf16.msra.mxu1 %v238_v0  ;;  %v236_v2 = vld [vmem:[#allocation6 + $0x28] sm:$0xff]  ;;  %v235_v3 = vld [vmem:[#allocation6 + $0x20] sm:$0xff]  ;;  %v234_v4 = vld [vmem:[#allocation6 + $0x18] sm:$0xff]  ;;  %s178_s25 = sshll.u32 %s337_s24, 4  ;;  %s338_s29 = smov 128   ;;  %s179_s25 = int_to_ptr.vmem [resolvable:$true] %s178_s25 }
   0xe   :  { %v233_v5 = vld [vmem:[#allocation6 + $0x10] sm:$0xff]  ;;  %v232_v6 = vld [vmem:[#allocation6 + $0x8] sm:$0xff]  ;;  %v59_v7 = vld [vmem:[#allocation3 + $0x8] sm:$0xf] }
   0xf   :  { %v81_v8 = vunpack.c.l.b16 %v59_v7  ;;  %v231_v9 = vld [vmem:[#allocation6] sm:$0xff]  ;;  %v230_v10 = vld [vmem:[#allocation3] sm:$0xff] }
  0x10   :  { %v254_v12 = vld [vmem:[%s374_s2] ss:$0 sm:$0xff]  ;;  %s339_s2 = smov 8  }
  0x11   :  { %135 = vmatpush.bf16.msra.mxu0 %v237_v1  ;;  %240 = vmatpush.bf16.msra.mxu1 %v237_v1  ;;  %v83_v11 = vpack.c.b16 %v81_v8, %v81_v8 }
  0x15   :  { %136 = vmatpush.bf16.msra.mxu0 %v236_v2  ;;  %241 = vmatpush.bf16.msra.mxu1 %v236_v2 }
  0x19   :  { %137 = vmatpush.bf16.msra.mxu0 %v235_v3  ;;  %242 = vmatpush.bf16.msra.mxu1 %v235_v3 }
  0x1d   :  { %138 = vmatpush.bf16.msra.mxu0 %v234_v4  ;;  %243 = vmatpush.bf16.msra.mxu1 %v234_v4 }
  0x21   :  { %139 = vmatpush.bf16.msra.mxu0 %v233_v5  ;;  %244 = vmatpush.bf16.msra.mxu1 %v233_v5 }
  0x25   :  { %140 = vmatpush.bf16.msra.mxu0 %v232_v6  ;;  %245 = vmatpush.bf16.msra.mxu1 %v232_v6 }
  0x29   :  { %141 = vmatpush.bf16.msra.mxu0 %v231_v9  ;;  %246 = vmatpush.bf16.msra.mxu1 %v231_v9 }
  0x2c   :  { %142 = vmatmul.bf16.vlgmr.msra.gmra.mxu0 %v230_v10  ;;  %147 = vmatmul.bf16.vlgmr.msra.gmra.mxu1 %v83_v11 }
  0xa9   :  { %v143_v13 = vpop.f32.mrf.mxu0  ;;  %v148_v14 = vpop.f32.mrf.mxu1 }
  0xaa   :  { %v168_v15 = vadd.f32 %v254_v12, %v143_v13  ;;  %v170_v16 = vadd.f32 %v254_v12, %v148_v14 }
  0xac   :  { %171 = vst [vmem:[#allocation8] sm:$0xff] %v168_v15 }
  0xad   :  { %173 = vst [vmem:[#allocation8 + $0x10] sm:$0xff] %v170_v16 }
  0xb1   :  { %v145_v17 = vpop.f32.mrf.mxu0  ;;  %v150_v18 = vpop.f32.mrf.mxu1 }
  0xb2   :  { %v169_v19 = vadd.f32 %v254_v12, %v145_v17 }
  0xb4   :  { %172 = vst [vmem:[#allocation8 + $0x8] sm:$0xff] %v169_v19 }
  0xb5   :  { %186 = dma.vmem_to_hbm [thread:$0]  %s179_s25, 384, %s181_s28, [#allocation5], %s338_s29, %s338_s29, %s339_s2  }
  0xb6   :  { %331 = dma.done.wait [#allocation5], 384  }
  0xb7   :  { %332 = vsyncadd [#allocation5], 4294966912 }
  0xb8   :  { %191 = vsyncpa [#allocation4], 1 }
  0xb9   :  { %192 = vsyncpa [#allocation7], 1 }
  0xba   :  { %193 = vsyncpa [#allocation5], 1 }

</bundles_post_ra>
